<compile_context>
chip_gen: v7x
topology: tpu7x:2x2x1
jax: 0.10.0
libtpu: 0.0.40
codegen_flags: <defaults>
</compile_context>

<pallas_src>
import functools

import jax
import jax.numpy as jnp
from jax import lax
from jax.experimental import pallas as pl
from jax.experimental.pallas import tpu as pltpu

_LANES = 128
_SUBLANES = 8
_STRIP_ROWS = 512           # rows processed per inner fori_loop iteration
_MAX_BLOCK_ROWS = 8192      # (8192, 128) f32 = 4 MiB per input block


def _piecewise(temp, thresh, alpha):
    """Sequential 3-step masked transform of |diff| (PyTorch in-place order)."""
    t = jnp.float32(thresh)
    a = jnp.float32(alpha)
    ta = jnp.float32(thresh + alpha)
    inv_t = jnp.float32(1.0 / thresh)
    inv_2a = jnp.float32(1.0 / (2.0 * alpha))
    # (1) temp[temp < t] = temp**2 / t
    temp = jnp.where(temp < t, temp * temp * inv_t, temp)
    # (2) on the modified temp: 2*temp - (temp-t)^2/(2a) - t
    #     == temp + d*(1 - d/(2a)) with d = temp - t   (fewer VALU ops)
    d = temp - t
    m2 = (temp >= t) & (temp <= ta)
    temp = jnp.where(m2, temp + d * (1.0 - d * inv_2a), temp)
    # (3) on the (again) modified temp: temp[temp > t+a] += a/2
    temp = jnp.where(temp > ta, temp + a * 0.5, temp)
    return temp


def _myloss2_block_kernel(x1_ref, x2_ref, out_ref, *, thresh, alpha,
                          block_rows, strip, valid_rows, need_mask):
    """One grid step: transform one (block_rows,128) tile -> (8,128) partial sum."""
    nstrips = block_rows // strip

    def block_partial(masked, rem):
        def strip_body(s, acc):
            start = pl.multiple_of(s * strip, strip)
            d = (x1_ref[pl.ds(start, strip), :].astype(jnp.float32) -
                 x2_ref[pl.ds(start, strip), :].astype(jnp.float32))
            if masked:
                # Only the last (ragged) grid block takes this path: rows past
                # `rem` hold Pallas boundary-block garbage -> zero them
                # (f(0) == 0, so they contribute nothing to the sum).
                limit = rem - start            # scalar; vector side is iota+cmp+select
                row = lax.broadcasted_iota(jnp.int32, (strip, _LANES), 0)
                d = jnp.where(row < limit, d, 0.0)
            temp = _piecewise(jnp.abs(d), thresh, alpha)
            # Lane-parallel partial reduce: (strip,128) -> (8,128) via VPU adds
            # over whole vregs only (no cross-lane XLU reduce in the hot loop).
            part = jnp.sum(
                temp.reshape(strip // _SUBLANES, _SUBLANES, _LANES), axis=0)
            return acc + part

        return lax.fori_loop(0, nstrips, strip_body,
                             jnp.zeros((_SUBLANES, _LANES), jnp.float32))

    if need_mask:
        # Hoisted scalar: rows of this block that are real data.
        rem = valid_rows - pl.program_id(0) * block_rows

        @pl.when(rem >= block_rows)        # full blocks: mask-free fast path
        def _():
            out_ref[0] = block_partial(False, rem)

        @pl.when(rem < block_rows)         # last, ragged block only
        def _():
            out_ref[0] = block_partial(True, rem)
    else:
        out_ref[0] = block_partial(False, 0)


def _round_up(x, m):
    return (x + m - 1) // m * m


def _choose_tiling(rows):
    """Pick block_rows (multiple of 8, <= rows) and strip (divides block_rows)."""
    if rows <= _STRIP_ROWS:
        block_rows = _SUBLANES * (rows // _SUBLANES)   # >= 8, <= rows
        return block_rows, block_rows
    # At least two chunks so both v7x TensorCores get work, and an (almost
    # always) even, balanced chunk count; cap blocks at 4 MiB/input.
    pairs = pl.cdiv(rows, 2 * _MAX_BLOCK_ROWS)
    block_rows = min(_MAX_BLOCK_ROWS,
                     _round_up(pl.cdiv(rows, 2 * pairs), _STRIP_ROWS))
    return block_rows, _STRIP_ROWS


def myloss2(input1, input2, thresh=1, alpha=2):
    assert input1.shape == input2.shape
    numel = input1.size
    thresh = float(thresh)
    alpha = float(alpha)

    x1 = input1.reshape(-1)
    x2 = input2.reshape(-1)

    rows = numel // _LANES
    total = jnp.float32(0.0)

    if rows >= _SUBLANES:
        main = rows * _LANES
        if main != numel:
            # TODO(synk): this prefix slice may cost an HBM copy when
            # numel % 128 != 0; a manual-DMA (pl.ANY) path could avoid it.
            x1m = lax.slice(x1, (0,), (main,))
            x2m = lax.slice(x2, (0,), (main,))
        else:
            x1m, x2m = x1, x2                      # contiguous view, no copy
        x1m = x1m.reshape(rows, _LANES)
        x2m = x2m.reshape(rows, _LANES)

        block_rows, strip = _choose_tiling(rows)
        n_chunks = pl.cdiv(rows, block_rows)
        need_mask = (rows % block_rows) != 0       # only the last chunk pays

        kernel = functools.partial(
            _myloss2_block_kernel,
            thresh=thresh, alpha=alpha,
            block_rows=block_rows, strip=strip,
            valid_rows=rows, need_mask=need_mask)

        partials = pl.pallas_call(
            kernel,
            out_shape=jax.ShapeDtypeStruct(
                (n_chunks, _SUBLANES, _LANES), jnp.float32),
            grid_spec=pltpu.PrefetchScalarGridSpec(
                num_scalar_prefetch=0,
                grid=(n_chunks,),
                in_specs=[
                    pl.BlockSpec((block_rows, _LANES), lambda i: (i, 0)),
                    pl.BlockSpec((block_rows, _LANES), lambda i: (i, 0)),
                ],
                out_specs=pl.BlockSpec((1, _SUBLANES, _LANES),
                                       lambda i: (i, 0, 0)),
            ),
            compiler_params=pltpu.CompilerParams(
                # Independent per-chunk partials -> parallel grid axis; shards
                # chunks across the two v7x TensorCores, no-op on v5e/v6e.
                dimension_semantics=("parallel",),
                # 16 MiB double-buffered inputs + small strip scratch; above
                # v5e's 16 MiB default scoped VMEM, well under v7x's 64 MiB.
                vmem_limit_bytes=32 * 1024 * 1024,
            ),
        )(x1m, x2m)
        total = total + jnp.sum(partials)
        tail_start = main
    else:
        tail_start = 0

    if tail_start != numel:
        # Sub-128-element remainder (or sub-1024-element whole input): plain
        # JAX — avoids any HBM padding copy of the full tensors.
        t1 = lax.slice(x1, (tail_start,), (numel,)).astype(jnp.float32)
        t2 = lax.slice(x2, (tail_start,), (numel,)).astype(jnp.float32)
        total = total + jnp.sum(_piecewise(jnp.abs(t1 - t2), thresh, alpha))

    return total / jnp.float32(numel)


def _reference(input1, input2, thresh=1, alpha=2):
    t = jnp.float32(thresh)
    a = jnp.float32(alpha)
    temp = jnp.abs(input1.astype(jnp.float32) - input2.astype(jnp.float32))
    temp = jnp.where(temp < t, temp * temp / t, temp)
    m2 = (temp <= t + a) & (temp >= t)
    temp = jnp.where(m2, temp * 2.0 - (temp - t) ** 2 / (2.0 * a) - t, temp)
    temp = jnp.where(temp > t + a, temp + a / 2.0, temp)
    return jnp.mean(temp)


if __name__ == "__main__":
    key = jax.random.PRNGKey(0)

    shapes = [
        (2, 4, 16, 16),    # primary NCHW test shape (aligned, single chunk)
        (2, 8, 128, 128),  # multi-chunk + multi-strip, exactly tiled
        (3, 5, 7, 11),     # numel % 128 != 0: lane tail + ragged masked chunk
    ]
    for idx, shape in enumerate(shapes):
        k1, k2 = jax.random.split(jax.random.fold_in(key, idx))
        # spread values so all three regimes (<t, [t,t+a], >t+a) are exercised
        a = jax.random.normal(k1, shape, dtype=jnp.float32) * 2.5
        b = jax.random.normal(k2, shape, dtype=jnp.float32) * 2.5

        loss = jax.block_until_ready(myloss2(a, b, thresh=1, alpha=2))
        ref = _reference(a, b, thresh=1, alpha=2)
        assert jnp.allclose(loss, ref, rtol=1e-4, atol=1e-5), (shape, loss, ref)

    print("KERNEL_OK")
</pallas_src>

<mosaic_0001>
module attributes {stable_mosaic.version = 11 : i64} {
  func.func @_myloss2_block_kernel(%arg0: i32, %arg1: memref<16x128xf32, #tpu.memory_space<vmem>>, %arg2: memref<16x128xf32, #tpu.memory_space<vmem>>, %arg3: memref<1x8x128xf32, #tpu.memory_space<vmem>>) attributes {dimension_semantics = [#tpu.dimension_semantics<parallel>], iteration_bounds = array<i64: 1>, scalar_prefetch = 0 : i64, scratch_operands = 0 : i64, tpu.core_type = #tpu.core_type<tc>, window_params = [{transform_indices = @transform_0, window_bounds = array<i64: 16, 128>}, {transform_indices = @transform_1, window_bounds = array<i64: 16, 128>}, {transform_indices = @transform_2, window_bounds = array<i64: 1, 8, 128>}]} {
    %cst = arith.constant 0.000000e+00 : f32
    %0 = vector.broadcast %cst : f32 to vector<8x128xf32>
    %c0_i32 = arith.constant 0 : i32
    %c16_i32 = arith.constant 16 : i32
    %1 = arith.muli %c0_i32, %c16_i32 : i32
    %2 = tpu.assume_multiple %1, 16 : i32
    %3 = arith.index_cast %2 : i32 to index
    %c0 = arith.constant 0 : index
    %4 = vector.load %arg1[%3, %c0] : memref<16x128xf32, #tpu.memory_space<vmem>>, vector<16x128xf32>
    %5 = arith.index_cast %2 : i32 to index
    %c0_0 = arith.constant 0 : index
    %6 = vector.load %arg2[%5, %c0_0] : memref<16x128xf32, #tpu.memory_space<vmem>>, vector<16x128xf32>
    %7 = arith.subf %4, %6 : vector<16x128xf32>
    %8 = math.absf %7 : vector<16x128xf32>
    %cst_1 = arith.constant 1.000000e+00 : f32
    %9 = vector.broadcast %cst_1 : f32 to vector<16x128xf32>
    %10 = arith.cmpf olt, %8, %9 : vector<16x128xf32>
    %11 = arith.mulf %8, %8 : vector<16x128xf32>
    %cst_2 = arith.constant 1.000000e+00 : f32
    %12 = vector.broadcast %cst_2 : f32 to vector<16x128xf32>
    %13 = arith.mulf %11, %12 : vector<16x128xf32>
    %14 = arith.select %10, %13, %8 : vector<16x128xi1>, vector<16x128xf32>
    %cst_3 = arith.constant 1.000000e+00 : f32
    %15 = vector.broadcast %cst_3 : f32 to vector<16x128xf32>
    %16 = arith.subf %14, %15 : vector<16x128xf32>
    %cst_4 = arith.constant 1.000000e+00 : f32
    %17 = vector.broadcast %cst_4 : f32 to vector<16x128xf32>
    %18 = arith.cmpf oge, %14, %17 : vector<16x128xf32>
    %cst_5 = arith.constant 3.000000e+00 : f32
    %19 = vector.broadcast %cst_5 : f32 to vector<16x128xf32>
    %20 = arith.cmpf ole, %14, %19 : vector<16x128xf32>
    %21 = arith.andi %18, %20 : vector<16x128xi1>
    %cst_6 = arith.constant 2.500000e-01 : f32
    %22 = vector.broadcast %cst_6 : f32 to vector<16x128xf32>
    %23 = arith.mulf %16, %22 : vector<16x128xf32>
    %cst_7 = arith.constant 1.000000e+00 : f32
    %24 = vector.broadcast %cst_7 : f32 to vector<16x128xf32>
    %25 = arith.subf %24, %23 : vector<16x128xf32>
    %26 = arith.mulf %16, %25 : vector<16x128xf32>
    %27 = arith.addf %14, %26 : vector<16x128xf32>
    %28 = arith.select %21, %27, %14 : vector<16x128xi1>, vector<16x128xf32>
    %cst_8 = arith.constant 3.000000e+00 : f32
    %29 = vector.broadcast %cst_8 : f32 to vector<16x128xf32>
    %30 = arith.cmpf ogt, %28, %29 : vector<16x128xf32>
    %cst_9 = arith.constant 2.000000e+00 : f32
    %cst_10 = arith.constant 5.000000e-01 : f32
    %31 = arith.mulf %cst_9, %cst_10 : f32
    %32 = vector.broadcast %31 : f32 to vector<16x128xf32>
    %33 = arith.addf %28, %32 : vector<16x128xf32>
    %34 = arith.select %30, %33, %28 : vector<16x128xi1>, vector<16x128xf32>
    %35 = vector.shape_cast %34 : vector<16x128xf32> to vector<2x8x128xf32>
    %cst_11 = arith.constant dense<0.000000e+00> : vector<8x128xf32>
    %36 = vector.multi_reduction <add>, %35, %cst_11 [0] : vector<2x8x128xf32> to vector<8x128xf32>
    %37 = arith.addf %0, %36 : vector<8x128xf32>
    %c1_i32 = arith.constant 1 : i32
    %c0_12 = arith.constant 0 : index
    %c0_13 = arith.constant 0 : index
    %c0_14 = arith.constant 0 : index
    %38 = vector.load %arg3[%c0_12, %c0_13, %c0_14] : memref<1x8x128xf32, #tpu.memory_space<vmem>>, vector<1x8x128xf32>
    %39 = vector.shape_cast %38 : vector<1x8x128xf32> to vector<8x128xf32>
    %40 = vector.shape_cast %37 : vector<8x128xf32> to vector<1x8x128xf32>
    tpu.vector_store %arg3[%c0_12, %c0_13, %c0_14], %40 {strides = array<i32>} : memref<1x8x128xf32, #tpu.memory_space<vmem>>, vector<1x8x128xf32>,
    return
  }
  func.func @transform_0(%arg0: i32) -> (i32, i32) {
    %c0_i32 = arith.constant 0 : i32
    %c0_i32_0 = arith.constant 0 : i32
    return %arg0, %c0_i32 : i32, i32
  }
  func.func @transform_1(%arg0: i32) -> (i32, i32) {
    %c0_i32 = arith.constant 0 : i32
    %c0_i32_0 = arith.constant 0 : i32
    return %arg0, %c0_i32 : i32, i32
  }
  func.func @transform_2(%arg0: i32) -> (i32, i32, i32) {
    %c0_i32 = arith.constant 0 : i32
    %c0_i32_0 = arith.constant 0 : i32
    %c0_i32_1 = arith.constant 0 : i32
    return %arg0, %c0_i32, %c0_i32_0 : i32, i32, i32
  }
}

</mosaic_0001>

<bundles_post_ra>
// kernel: tpu_custom_call.1
= control target key start
LH: loop header
LB: loop body
LE: loop exit
PB: predicated region body
PF: predicated region fallthrough
CT: control target
= control target key end

     0   :  { %7 = vsyncpa [#allocation3], 0  ;;  %s232_s0 = inlined_call_operand.hbm [shape: f32[16,128], index: 0, kind: input, shape index: {}]   ;;  %s233_s1 = inlined_call_operand.hbm [shape: f32[16,128], index: 1, kind: input, shape index: {}]   ;;  %s234_s2 = inlined_call_operand.hbm [shape: f32[1,8,128], index: 2, kind: output, shape index: {}]  }
   0x1   :  { %8 = vsyncpa [#allocation6], 0 }
   0x2   :  { %9 = vsyncpa [#allocation4], 0  ;;  %s176_s9 = smov [#allocation2]   ;;  %s104_s13 = scalar_lea.hbm %s232_s0, 256 }
   0x3   :  { %s15_s10 = sshll.u32 %s176_s9, 4  ;;  %p105_p0 = scmp.ne.s32.totalorder %s232_s0, %s104_s13  ;;  %s16_s10 = int_to_ptr.vmem [resolvable:$true] %s15_s10 }
   0x4   :  { %p108_p1 = scmp.lt.u32.totalorder %s104_s13, %s232_s0 }
   0x6   :  { %p110_p2 = pnand %p108_p1, %p105_p0 }
   0x8   :  { %113 = shalt.err (!%p110_p2)
}
   0x9   :  { %s114_s18 = scalar_lea.vmem %s16_s10, 256  ;;  %p119_p4 = scmp.lt.s32.totalorder %s16_s10, %s16_s10 }
   0xa   :  { %p115_p3 = scmp.ne.s32.totalorder %s16_s10, %s114_s18  ;;  %p120_p5 = scmp.lt.s32.totalorder %s114_s18, %s114_s18 }
   0xc   :  { %p121_p6 = por %p120_p5, %p119_p4 }
   0xe   :  { %p122_p7 = pnand %p121_p6, %p115_p3 }
  0x10   :  { %125 = shalt.err (!%p122_p7)
}
  0x11   :  { %s177_s19 = smov 128   ;;  %s178_s20 = smov 8  }
  0x12   :  { %21 = dma.hbm_to_vmem [thread:$0]  %s232_s0, 256, %s16_s10, [#allocation3], %s177_s19, %s177_s19, %s178_s20  }
  0x13   :  { %s179_s23 = smov [#allocation5]   ;;  %s126_s27 = scalar_lea.hbm %s233_s1, 256 }
  0x14   :  { %s27_s24 = sshll.u32 %s179_s23, 4  ;;  %p127_p8 = scmp.ne.s32.totalorder %s233_s1, %s126_s27  ;;  %s28_s24 = int_to_ptr.vmem [resolvable:$true] %s27_s24 }
  0x15   :  { %p130_p9 = scmp.lt.u32.totalorder %s126_s27, %s233_s1 }
  0x17   :  { %p132_p10 = pnand %p130_p9, %p127_p8 }
  0x19   :  { %135 = shalt.err (!%p132_p10)
}
  0x1a   :  { %s136_s4 = scalar_lea.vmem %s28_s24, 256  ;;  %p141_p12 = scmp.lt.s32.totalorder %s28_s24, %s28_s24 }
  0x1b   :  { %p137_p11 = scmp.ne.s32.totalorder %s28_s24, %s136_s4  ;;  %p142_p13 = scmp.lt.s32.totalorder %s136_s4, %s136_s4 }
  0x1d   :  { %p143_p0 = por %p142_p13, %p141_p12 }
  0x1f   :  { %p144_p1 = pnand %p143_p0, %p137_p11 }
  0x21   :  { %147 = shalt.err (!%p144_p1)
}
  0x22   :  { %33 = dma.hbm_to_vmem [thread:$0]  %s233_s1, 256, %s28_s24, [#allocation6], %s177_s19, %s177_s19, %s178_s20  }
  0x23   :  { %170 = dma.done.wait [#allocation3], 256  }
  0x24   :  { %171 = vsyncadd [#allocation3], 4294967040 }
  0x25   :  { %172 = dma.done.wait [#allocation6], 256  }
  0x26   :  { %173 = vsyncadd [#allocation6], 4294967040  ;;  %v40_v0 = vld [vmem:[#allocation2] sm:$0xff]  ;;  %v41_v1 = vld [vmem:[#allocation2 + $0x8] sm:$0xff]  ;;  %s180_s1 = smov [#allocation7]  }
  0x27   :  { %v42_v2 = vld [vmem:[#allocation5] sm:$0xff]  ;;  %v43_v3 = vld [vmem:[#allocation5 + $0x8] sm:$0xff]  ;;  %s87_s6 = sshll.u32 %s180_s1, 4  ;;  %s88_s6 = int_to_ptr.vmem [resolvable:$true] %s87_s6 }
  0x28   :  { %v44_v4 = vsub.f32 %v40_v0, %v42_v2  ;;  %v45_v5 = vsub.f32 %v41_v1, %v43_v3  ;;  %s148_s7 = scalar_lea.vmem %s88_s6, 128  ;;  %p153_p3 = scmp.lt.s32.totalorder %s88_s6, %s88_s6 }
  0x29   :  { %p149_p2 = scmp.ne.s32.totalorder %s88_s6, %s148_s7  ;;  %p154_p4 = scmp.lt.s32.totalorder %s148_s7, %s148_s7 }
  0x2a   :  { %v46_v6 = vand.u32 2147483647, %v44_v4  ;;  %v47_v7 = vand.u32 2147483647, %v45_v5 }
  0x2b   :  { %p155_p5 = por %p154_p4, %p153_p3 }
  0x2c   :  { %vm48_vm0 = vcmp.lt.f32.partialorder %v46_v6, 1.0  ;;  %v50_v8 = vmul.f32 %v46_v6, %v46_v6  ;;  %vm49_vm1 = vcmp.lt.f32.partialorder %v47_v7, 1.0  ;;  %v51_v9 = vmul.f32 %v47_v7, %v47_v7 }
  0x2d   :  { %p156_p6 = pnand %p155_p5, %p149_p2 }
  0x2e   :  { %v52_v10 = vsel %vm48_vm0, %v50_v8, %v46_v6  ;;  %v53_v11 = vsel %vm49_vm1, %v51_v9, %v47_v7 }
  0x2f   :  { %v97_v12 = vadd.f32 -1.0, %v52_v10  ;;  %v98_v13 = vadd.f32 -1.0, %v53_v11  ;;  %vm56_vm2 = vcmp.ge.f32.partialorder %v52_v10, 1.0  ;;  %vm58_vm3 = vcmp.le.f32.partialorder %v52_v10, 3.0 }
  0x30   :  { %vm57_vm4 = vcmp.ge.f32.partialorder %v53_v11, 1.0  ;;  %vm59_vm5 = vcmp.le.f32.partialorder %v53_v11, 3.0  ;;  %vm60_vm6 = vmand %vm56_vm2, %vm58_vm3 }
  0x31   :  { %v62_v14 = vmul.f32 0.25, %v97_v12  ;;  %v63_v15 = vmul.f32 0.25, %v98_v13  ;;  %vm61_vm7 = vmand %vm57_vm4, %vm59_vm5 }
  0x33   :  { %v64_v16 = vsub.f32 1.0, %v62_v14  ;;  %v65_v17 = vsub.f32 1.0, %v63_v15 }
  0x35   :  { %v66_v18 = vmul.f32 %v97_v12, %v64_v16  ;;  %v67_v19 = vmul.f32 %v98_v13, %v65_v17 }
  0x37   :  { %v68_v20 = vadd.f32 %v66_v18, %v52_v10  ;;  %v69_v21 = vadd.f32 %v67_v19, %v53_v11 }
  0x39   :  { %v70_v22 = vsel %vm60_vm6, %v68_v20, %v52_v10  ;;  %v71_v23 = vsel %vm61_vm7, %v69_v21, %v53_v11 }
  0x3a   :  { %vm72_vm8 = vcmp.gt.f32.partialorder %v70_v22, 3.0  ;;  %v74_v24 = vadd.f32 1.0, %v70_v22  ;;  %vm73_vm9 = vcmp.gt.f32.partialorder %v71_v23, 3.0  ;;  %v75_v25 = vadd.f32 1.0, %v71_v23 }
  0x3c   :  { %v76_v26 = vsel %vm72_vm8, %v74_v24, %v70_v22  ;;  %v77_v27 = vsel %vm73_vm9, %v75_v25, %v71_v23 }
  0x3d   :  { %v78_v28 = vadd.f32 %v77_v27, %v76_v26 }
  0x3f   :  { %80 = vst [vmem:[#allocation7] sm:$0xff] %v78_v28 }
  0x40   :  { %159 = shalt.err (!%p156_p6)
}
  0x41   :  { %s160_s10 = scalar_lea.hbm %s234_s2, 128 }
  0x42   :  { %p161_p7 = scmp.ne.s32.totalorder %s234_s2, %s160_s10  ;;  %p164_p8 = scmp.lt.u32.totalorder %s160_s10, %s234_s2 }
  0x44   :  { %p166_p9 = pnand %p164_p8, %p161_p7 }
  0x46   :  { %169 = shalt.err (!%p166_p9)
}
  0x47   :  { %90 = dma.vmem_to_hbm [thread:$0]  %s88_s6, 128, %s234_s2, [#allocation4]  }
  0x48   :  { %174 = dma.done.wait [#allocation4], 128  }
  0x49   :  { %175 = vsyncadd [#allocation4], 4294967168 }
  0x4a   :  { %94 = vsyncpa [#allocation3], 1 }
  0x4b   :  { %95 = vsyncpa [#allocation6], 1 }
  0x4c   :  { %96 = vsyncpa [#allocation4], 1 }

</bundles_post_ra>
